<compile_context>
chip_gen: v5e
topology: v5e:2x2
jax: 0.10.0
libtpu: 0.0.40
codegen_flags: <defaults>
</compile_context>

<pallas_src>
import math
import functools

import jax
import jax.numpy as jnp
from jax import lax
from jax.experimental import pallas as pl
from jax.experimental.pallas import tpu as pltpu


def _cross_attention_kernel(h_ref, c_ref, m_ref,
                            wq_ref, bq_ref, wk_ref, bk_ref, wv_ref, bv_ref,
                            o_ref,
                            k_cache, v_cache, acc_ref,
                            *, num_heads, head_dim):
    # h_ref: (1, tq, D) bf16     c_ref: (1, Sk, Dc) bf16   m_ref: (1, 1, tq, Sk) bf16
    # wq_ref: (D, H) bf16 (1/sqrt(d) folded in)   bq_ref: (1, H) f32 (scale folded in)
    # wk_ref/wv_ref: (Dc, H) bf16                 bk_ref/bv_ref: (1, H) f32
    # o_ref: (1, tq, H)
    # k_cache/v_cache: (Sk, H) bf16 scratch (per-batch projected K/V)
    # acc_ref: (tq, H) f32 scratch (per-head output accumulator)
    qi = pl.program_id(1)

    # --- K/V projection: only depends on the batch block; do it once per batch.
    @pl.when(qi == 0)
    def _():
        c = c_ref[0]                                                   # (Sk, Dc) bf16
        k = jnp.dot(c, wk_ref[...], preferred_element_type=jnp.float32) + bk_ref[...]
        v = jnp.dot(c, wv_ref[...], preferred_element_type=jnp.float32) + bv_ref[...]
        k_cache[...] = k.astype(k_cache.dtype)                         # (Sk, H) bf16
        v_cache[...] = v.astype(v_cache.dtype)

    # --- Q projection for this q-tile (full-width, lane-dense MXU N = H).
    h = h_ref[0]                                                        # (tq, D) bf16
    q = jnp.dot(h, wq_ref[...], preferred_element_type=jnp.float32) + bq_ref[...]
    q = q.astype(jnp.bfloat16)                                          # bf16 MXU operand

    m = m_ref[0, 0].astype(jnp.float32)                                 # (tq, Sk) additive

    # --- Per-head attention (static unroll); contract on last axes (no K^T copy).
    # NOTE: head boundaries (multiples of head_dim) are generally not lane-
    # aligned; the per-head lane slices cost XLU rotates that currently have
    # slack relative to the MXU work.
    dn_qk = (((1,), (1,)), ((), ()))                                    # (tq,d)x(Sk,d)->(tq,Sk)
    for hd in range(num_heads):
        lo = hd * head_dim
        qh = q[:, lo:lo + head_dim]                                     # (tq, d) bf16
        kh = k_cache[:, lo:lo + head_dim]                               # (Sk, d) bf16
        vh = v_cache[:, lo:lo + head_dim]                               # (Sk, d) bf16

        s = lax.dot_general(qh, kh, dn_qk,
                            preferred_element_type=jnp.float32) + m     # (tq, Sk) f32
        s = s - jnp.max(s, axis=-1, keepdims=True)
        p = jnp.exp(s)
        p = p * pl.reciprocal(jnp.sum(p, axis=-1, keepdims=True), approx=True)
        acc_ref[:, lo:lo + head_dim] = jnp.dot(
            p.astype(jnp.bfloat16), vh, preferred_element_type=jnp.float32)

    # Single lane-dense store of the whole (tq, H) tile in final layout.
    o_ref[0] = acc_ref[...].astype(o_ref.dtype)


def cross_attention(hidden_states, context, attention_mask, params, num_heads):
    """Pallas implementation of CrossAttention.forward (eval mode).

    hidden_states: (B, Sq, D)   context: (B, Sk, Dc)
    attention_mask: (B, 1, Sq, Sk) additive (broadcasts over heads)
    Returns: (B, Sq, all_head_size)
    """
    B, Sq, D = hidden_states.shape
    _, Sk, Dc = context.shape
    wq, bq, wk, bk, wv, bv = (params["wq"], params["bq"], params["wk"],
                              params["bk"], params["wv"], params["bv"])
    H = wq.shape[0]                  # all_head_size
    d = H // num_heads               # attention_head_size
    scale = 1.0 / math.sqrt(d)

    # Pre-transpose weights once to (in, out); fold the 1/sqrt(d) softmax scale
    # into the Q projection; cast MXU operands to bf16.
    wqT = (wq.T * scale).astype(jnp.bfloat16)        # (D,  H)
    wkT = wk.T.astype(jnp.bfloat16)                  # (Dc, H)
    wvT = wv.T.astype(jnp.bfloat16)                  # (Dc, H)
    bq2 = (bq * scale).reshape(1, H).astype(jnp.float32)
    bk2 = bk.reshape(1, H).astype(jnp.float32)
    bv2 = bv.reshape(1, H).astype(jnp.float32)

    h_bf = hidden_states.astype(jnp.bfloat16)
    c_bf = context.astype(jnp.bfloat16)
    m_bf = attention_mask.astype(jnp.bfloat16)       # additive mask; bf16 stream

    # Query tiling: bound the (tq, Sk) score/mask working set.
    tq = Sq if Sq <= 128 else 128
    nq = pl.cdiv(Sq, tq)

    kernel = functools.partial(_cross_attention_kernel,
                               num_heads=num_heads, head_dim=d)

    out = pl.pallas_call(
        kernel,
        out_shape=jax.ShapeDtypeStruct((B, Sq, H), hidden_states.dtype),
        grid_spec=pltpu.PrefetchScalarGridSpec(
            num_scalar_prefetch=0,
            grid=(B, nq),
            in_specs=[
                pl.BlockSpec((1, tq, D),      lambda b, qi: (b, qi, 0)),     # hidden
                pl.BlockSpec((1, Sk, Dc),     lambda b, qi: (b, 0, 0)),      # context
                pl.BlockSpec((1, 1, tq, Sk),  lambda b, qi: (b, 0, qi, 0)),  # mask
                pl.BlockSpec((D, H),          lambda b, qi: (0, 0)),         # Wq^T * scale
                pl.BlockSpec((1, H),          lambda b, qi: (0, 0)),         # bq * scale
                pl.BlockSpec((Dc, H),         lambda b, qi: (0, 0)),         # Wk^T
                pl.BlockSpec((1, H),          lambda b, qi: (0, 0)),         # bk
                pl.BlockSpec((Dc, H),         lambda b, qi: (0, 0)),         # Wv^T
                pl.BlockSpec((1, H),          lambda b, qi: (0, 0)),         # bv
            ],
            out_specs=pl.BlockSpec((1, tq, H), lambda b, qi: (b, qi, 0)),
            scratch_shapes=[
                pltpu.VMEM((Sk, H), jnp.bfloat16),   # per-batch K cache
                pltpu.VMEM((Sk, H), jnp.bfloat16),   # per-batch V cache
                pltpu.VMEM((tq, H), jnp.float32),    # output accumulator
            ],
        ),
        compiler_params=pltpu.CompilerParams(
            # qi must be "arbitrary": the K/V caches carry state across q-tiles.
            dimension_semantics=("parallel", "arbitrary"),
            vmem_limit_bytes=48 * 1024 * 1024),
    )(h_bf, c_bf, m_bf, wqT, bq2, wkT, bk2, wvT, bv2)

    return out


def init_params(key, hidden_size, ctx_dim, all_head_size):
    """Deterministic nn.Linear-style init."""
    ks = jax.random.split(key, 6)
    def linear(kw, kb, fan_in, fan_out):
        bound = 1.0 / math.sqrt(fan_in)
        w = jax.random.uniform(kw, (fan_out, fan_in), jnp.float32, -bound, bound)
        b = jax.random.uniform(kb, (fan_out,), jnp.float32, -bound, bound)
        return w, b
    wq, bq = linear(ks[0], ks[1], hidden_size, all_head_size)
    wk, bk = linear(ks[2], ks[3], ctx_dim, all_head_size)
    wv, bv = linear(ks[4], ks[5], ctx_dim, all_head_size)
    return dict(wq=wq, bq=bq, wk=wk, bk=bk, wv=wv, bv=bv)


def _reference(hidden_states, context, attention_mask, params, num_heads):
    """Pure-JAX f32 reference mirroring the PyTorch forward (eval mode)."""
    B, Sq, _ = hidden_states.shape
    _, Sk, _ = context.shape
    H = params["wq"].shape[0]
    d = H // num_heads
    q = hidden_states @ params["wq"].T + params["bq"]
    k = context @ params["wk"].T + params["bk"]
    v = context @ params["wv"].T + params["bv"]
    def split(x, S):
        return x.reshape(B, S, num_heads, d).transpose(0, 2, 1, 3)
    q, k, v = split(q, Sq), split(k, Sk), split(v, Sk)
    scores = jnp.einsum("bhqd,bhkd->bhqk", q, k) / math.sqrt(d)
    scores = scores + attention_mask
    probs = jax.nn.softmax(scores, axis=-1)
    ctx = jnp.einsum("bhqk,bhkd->bhqd", probs, v)
    return ctx.transpose(0, 2, 1, 3).reshape(B, Sq, H)


if __name__ == "__main__":
    # NOTE: toy shapes for correctness only — tune tq/buffering on production
    # hiverformer shapes (H >= 256, Sk in the hundreds+), not these.
    B, Sq, Sk = 2, 8, 16
    hidden_size = 32
    ctx_dim = 32
    num_heads = 4
    dropout_prob = 0.1  # eval mode => identity

    key = jax.random.PRNGKey(0)
    k_h, k_c, k_m, k_p = jax.random.split(key, 4)

    hidden_states = jax.random.normal(k_h, (B, Sq, hidden_size), jnp.float32)
    context = jax.random.normal(k_c, (B, Sk, ctx_dim), jnp.float32)
    mask_bits = jax.random.bernoulli(k_m, 0.9, (B, 1, Sq, Sk))
    attention_mask = jnp.where(mask_bits, 0.0, -1e9).astype(jnp.float32)

    params = init_params(k_p, hidden_size, ctx_dim, hidden_size)

    out = cross_attention(hidden_states, context, attention_mask, params,
                          num_heads)
    out = jax.block_until_ready(out)

    ref = _reference(hidden_states, context, attention_mask, params, num_heads)
    assert out.shape == (B, Sq, hidden_size)
    # bf16 MXU operands + approx reciprocal in the softmax => loosened tolerance
    # vs. the pure-f32 reference.
    assert jnp.allclose(out, ref, atol=5e-2, rtol=5e-2), "mismatch vs reference"

    print("KERNEL_OK")
</pallas_src>

<mosaic_0001>
module attributes {stable_mosaic.version = 11 : i64} {
  func.func @_cross_attention_kernel(%arg0: i32, %arg1: i32, %arg2: memref<1x8x32xbf16, #tpu.memory_space<vmem>>, %arg3: memref<1x16x32xbf16, #tpu.memory_space<vmem>>, %arg4: memref<1x1x8x16xbf16, #tpu.memory_space<vmem>>, %arg5: memref<32x32xbf16, #tpu.memory_space<vmem>>, %arg6: memref<1x32xf32, #tpu.memory_space<vmem>>, %arg7: memref<32x32xbf16, #tpu.memory_space<vmem>>, %arg8: memref<1x32xf32, #tpu.memory_space<vmem>>, %arg9: memref<32x32xbf16, #tpu.memory_space<vmem>>, %arg10: memref<1x32xf32, #tpu.memory_space<vmem>>, %arg11: memref<1x8x32xf32, #tpu.memory_space<vmem>>, %arg12: memref<16x32xbf16, #tpu.memory_space<vmem>>, %arg13: memref<16x32xbf16, #tpu.memory_space<vmem>>, %arg14: memref<8x32xf32, #tpu.memory_space<vmem>>) attributes {dimension_semantics = [#tpu.dimension_semantics<parallel>, #tpu.dimension_semantics<arbitrary>], iteration_bounds = array<i64: 2, 1>, scalar_prefetch = 0 : i64, scratch_operands = 3 : i64, tpu.core_type = #tpu.core_type<tc>, window_params = [{transform_indices = @transform_0, window_bounds = array<i64: 1, 8, 32>}, {transform_indices = @transform_1, window_bounds = array<i64: 1, 16, 32>}, {transform_indices = @transform_2, window_bounds = array<i64: 1, 1, 8, 16>}, {pipeline_mode = #tpu.pipeline_mode<synchronous>, transform_indices = @transform_3, window_bounds = array<i64: 32, 32>}, {pipeline_mode = #tpu.pipeline_mode<synchronous>, transform_indices = @transform_4, window_bounds = array<i64: 1, 32>}, {pipeline_mode = #tpu.pipeline_mode<synchronous>, transform_indices = @transform_5, window_bounds = array<i64: 32, 32>}, {pipeline_mode = #tpu.pipeline_mode<synchronous>, transform_indices = @transform_6, window_bounds = array<i64: 1, 32>}, {pipeline_mode = #tpu.pipeline_mode<synchronous>, transform_indices = @transform_7, window_bounds = array<i64: 32, 32>}, {pipeline_mode = #tpu.pipeline_mode<synchronous>, transform_indices = @transform_8, window_bounds = array<i64: 1, 32>}, {transform_indices = @transform_9, window_bounds = array<i64: 1, 8, 32>}]} {
    %c0_i32 = arith.constant 0 : i32
    %0 = arith.cmpi eq, %arg1, %c0_i32 : i32
    %1 = arith.extui %0 : i1 to i32
    %c0_i32_0 = arith.constant 0 : i32
    %2 = arith.cmpi ne, %1, %c0_i32_0 : i32
    scf.if %2 {
      %c0_53 = arith.constant 0 : index
      %c0_54 = arith.constant 0 : index
      %c0_55 = arith.constant 0 : index
      %90 = vector.load %arg3[%c0_53, %c0_54, %c0_55] : memref<1x16x32xbf16, #tpu.memory_space<vmem>>, vector<1x16x32xbf16>
      %91 = vector.shape_cast %90 : vector<1x16x32xbf16> to vector<16x32xbf16>
      %c0_56 = arith.constant 0 : index
      %c0_57 = arith.constant 0 : index
      %92 = vector.load %arg7[%c0_56, %c0_57] : memref<32x32xbf16, #tpu.memory_space<vmem>>, vector<32x32xbf16>
      %cst_58 = arith.constant dense<0.000000e+00> : vector<16x32xf32>
      %93 = tpu.matmul %91, %92, %cst_58 {dimension_numbers = #tpu.dot_dimension_numbers<[1], [0], [0], [1], [0, 0, 1, 1], [], []>} : vector<16x32xbf16>, vector<32x32xbf16>, vector<16x32xf32> -> vector<16x32xf32>
      %c0_59 = arith.constant 0 : index
      %c0_60 = arith.constant 0 : index
      %94 = vector.load %arg8[%c0_59, %c0_60] : memref<1x32xf32, #tpu.memory_space<vmem>>, vector<1x32xf32>
      %95 = vector.broadcast %94 : vector<1x32xf32> to vector<16x32xf32>
      %96 = arith.addf %93, %95 : vector<16x32xf32>
      %c0_61 = arith.constant 0 : index
      %c0_62 = arith.constant 0 : index
      %97 = vector.load %arg9[%c0_61, %c0_62] : memref<32x32xbf16, #tpu.memory_space<vmem>>, vector<32x32xbf16>
      %cst_63 = arith.constant dense<0.000000e+00> : vector<16x32xf32>
      %98 = tpu.matmul %91, %97, %cst_63 {dimension_numbers = #tpu.dot_dimension_numbers<[1], [0], [0], [1], [0, 0, 1, 1], [], []>} : vector<16x32xbf16>, vector<32x32xbf16>, vector<16x32xf32> -> vector<16x32xf32>
      %c0_64 = arith.constant 0 : index
      %c0_65 = arith.constant 0 : index
      %99 = vector.load %arg10[%c0_64, %c0_65] : memref<1x32xf32, #tpu.memory_space<vmem>>, vector<1x32xf32>
      %100 = vector.broadcast %99 : vector<1x32xf32> to vector<16x32xf32>
      %101 = arith.addf %98, %100 : vector<16x32xf32>
      %102 = arith.truncf %96 : vector<16x32xf32> to vector<16x32xbf16>
      %c0_66 = arith.constant 0 : index
      %c0_67 = arith.constant 0 : index
      %103 = vector.load %arg12[%c0_66, %c0_67] : memref<16x32xbf16, #tpu.memory_space<vmem>>, vector<16x32xbf16>
      tpu.vector_store %arg12[%c0_66, %c0_67], %102 {strides = array<i32>} : memref<16x32xbf16, #tpu.memory_space<vmem>>, vector<16x32xbf16>,
      %104 = arith.truncf %101 : vector<16x32xf32> to vector<16x32xbf16>
      %c0_68 = arith.constant 0 : index
      %c0_69 = arith.constant 0 : index
      %105 = vector.load %arg13[%c0_68, %c0_69] : memref<16x32xbf16, #tpu.memory_space<vmem>>, vector<16x32xbf16>
      tpu.vector_store %arg13[%c0_68, %c0_69], %104 {strides = array<i32>} : memref<16x32xbf16, #tpu.memory_space<vmem>>, vector<16x32xbf16>,
    } else {
    }
    %c0 = arith.constant 0 : index
    %c0_1 = arith.constant 0 : index
    %c0_2 = arith.constant 0 : index
    %3 = vector.load %arg2[%c0, %c0_1, %c0_2] : memref<1x8x32xbf16, #tpu.memory_space<vmem>>, vector<1x8x32xbf16>
    %4 = vector.shape_cast %3 : vector<1x8x32xbf16> to vector<8x32xbf16>
    %c0_3 = arith.constant 0 : index
    %c0_4 = arith.constant 0 : index
    %5 = vector.load %arg5[%c0_3, %c0_4] : memref<32x32xbf16, #tpu.memory_space<vmem>>, vector<32x32xbf16>
    %cst = arith.constant dense<0.000000e+00> : vector<8x32xf32>
    %6 = tpu.matmul %4, %5, %cst {dimension_numbers = #tpu.dot_dimension_numbers<[1], [0], [0], [1], [0, 0, 1, 1], [], []>} : vector<8x32xbf16>, vector<32x32xbf16>, vector<8x32xf32> -> vector<8x32xf32>
    %c0_5 = arith.constant 0 : index
    %c0_6 = arith.constant 0 : index
    %7 = vector.load %arg6[%c0_5, %c0_6] : memref<1x32xf32, #tpu.memory_space<vmem>>, vector<1x32xf32>
    %8 = vector.broadcast %7 : vector<1x32xf32> to vector<8x32xf32>
    %9 = arith.addf %6, %8 : vector<8x32xf32>
    %10 = arith.truncf %9 : vector<8x32xf32> to vector<8x32xbf16>
    %c0_7 = arith.constant 0 : index
    %c0_8 = arith.constant 0 : index
    %c0_9 = arith.constant 0 : index
    %c0_10 = arith.constant 0 : index
    %11 = vector.load %arg4[%c0_7, %c0_8, %c0_9, %c0_10] : memref<1x1x8x16xbf16, #tpu.memory_space<vmem>>, vector<1x1x8x16xbf16>
    %12 = vector.shape_cast %11 : vector<1x1x8x16xbf16> to vector<8x16xbf16>
    %13 = arith.extf %12 : vector<8x16xbf16> to vector<8x16xf32>
    %14 = vector.extract_strided_slice %10 {offsets = [0, 0], sizes = [8, 8], strides = [1, 1]} : vector<8x32xbf16> to vector<8x8xbf16>
    %c0_11 = arith.constant 0 : index
    %c0_12 = arith.constant 0 : index
    %15 = vector.load %arg12[%c0_11, %c0_12] : memref<16x32xbf16, #tpu.memory_space<vmem>>, vector<16x8xbf16>
    %c0_13 = arith.constant 0 : index
    %c0_14 = arith.constant 0 : index
    %16 = vector.load %arg13[%c0_13, %c0_14] : memref<16x32xbf16, #tpu.memory_space<vmem>>, vector<16x8xbf16>
    %cst_15 = arith.constant dense<0.000000e+00> : vector<8x16xf32>
    %17 = tpu.matmul %14, %15, %cst_15 {dimension_numbers = #tpu.dot_dimension_numbers<[1], [1], [0], [0], [0, 0, 1, 0], [], []>} : vector<8x8xbf16>, vector<16x8xbf16>, vector<8x16xf32> -> vector<8x16xf32>
    %18 = arith.addf %17, %13 : vector<8x16xf32>
    %cst_16 = arith.constant dense<0xFF800000> : vector<8xf32>
    %19 = vector.multi_reduction <maximumf>, %18, %cst_16 [1] : vector<8x16xf32> to vector<8xf32>
    %20 = vector.shape_cast %19 : vector<8xf32> to vector<8x1xf32>
    %21 = vector.broadcast %20 : vector<8x1xf32> to vector<8x16xf32>
    %22 = arith.subf %18, %21 : vector<8x16xf32>
    %23 = math.exp %22 : vector<8x16xf32>
    %cst_17 = arith.constant dense<0.000000e+00> : vector<8xf32>
    %24 = vector.multi_reduction <add>, %23, %cst_17 [1] : vector<8x16xf32> to vector<8xf32>
    %25 = vector.shape_cast %24 : vector<8xf32> to vector<8x1xf32>
    %26 = tpu.reciprocal %25 {approx = true} : vector<8x1xf32> -> vector<8x1xf32>
    %27 = vector.broadcast %26 : vector<8x1xf32> to vector<8x16xf32>
    %28 = arith.mulf %23, %27 : vector<8x16xf32>
    %29 = arith.truncf %28 : vector<8x16xf32> to vector<8x16xbf16>
    %cst_18 = arith.constant dense<0.000000e+00> : vector<8x8xf32>
    %30 = tpu.matmul %29, %16, %cst_18 {dimension_numbers = #tpu.dot_dimension_numbers<[1], [0], [0], [1], [0, 0, 1, 1], [], []>} : vector<8x16xbf16>, vector<16x8xbf16>, vector<8x8xf32> -> vector<8x8xf32>
    %c0_19 = arith.constant 0 : index
    %c0_20 = arith.constant 0 : index
    %31 = vector.load %arg14[%c0_19, %c0_20] : memref<8x32xf32, #tpu.memory_space<vmem>>, vector<8x8xf32>
    tpu.vector_store %arg14[%c0_19, %c0_20], %30 {strides = array<i32>} : memref<8x32xf32, #tpu.memory_space<vmem>>, vector<8x8xf32>,
    %32 = vector.extract_strided_slice %10 {offsets = [0, 8], sizes = [8, 8], strides = [1, 1]} : vector<8x32xbf16> to vector<8x8xbf16>
    %c0_21 = arith.constant 0 : index
    %c8 = arith.constant 8 : index
    %33 = vector.load %arg12[%c0_21, %c8] : memref<16x32xbf16, #tpu.memory_space<vmem>>, vector<16x8xbf16>
    %c0_22 = arith.constant 0 : index
    %c8_23 = arith.constant 8 : index
    %34 = vector.load %arg13[%c0_22, %c8_23] : memref<16x32xbf16, #tpu.memory_space<vmem>>, vector<16x8xbf16>
    %cst_24 = arith.constant dense<0.000000e+00> : vector<8x16xf32>
    %35 = tpu.matmul %32, %33, %cst_24 {dimension_numbers = #tpu.dot_dimension_numbers<[1], [1], [0], [0], [0, 0, 1, 0], [], []>} : vector<8x8xbf16>, vector<16x8xbf16>, vector<8x16xf32> -> vector<8x16xf32>
    %36 = arith.addf %35, %13 : vector<8x16xf32>
    %cst_25 = arith.constant dense<0xFF800000> : vector<8xf32>
    %37 = vector.multi_reduction <maximumf>, %36, %cst_25 [1] : vector<8x16xf32> to vector<8xf32>
    %38 = vector.shape_cast %37 : vector<8xf32> to vector<8x1xf32>
    %39 = vector.broadcast %38 : vector<8x1xf32> to vector<8x16xf32>
    %40 = arith.subf %36, %39 : vector<8x16xf32>
    %41 = math.exp %40 : vector<8x16xf32>
    %cst_26 = arith.constant dense<0.000000e+00> : vector<8xf32>
    %42 = vector.multi_reduction <add>, %41, %cst_26 [1] : vector<8x16xf32> to vector<8xf32>
    %43 = vector.shape_cast %42 : vector<8xf32> to vector<8x1xf32>
    %44 = tpu.reciprocal %43 {approx = true} : vector<8x1xf32> -> vector<8x1xf32>
    %45 = vector.broadcast %44 : vector<8x1xf32> to vector<8x16xf32>
    %46 = arith.mulf %41, %45 : vector<8x16xf32>
    %47 = arith.truncf %46 : vector<8x16xf32> to vector<8x16xbf16>
    %cst_27 = arith.constant dense<0.000000e+00> : vector<8x8xf32>
    %48 = tpu.matmul %47, %34, %cst_27 {dimension_numbers = #tpu.dot_dimension_numbers<[1], [0], [0], [1], [0, 0, 1, 1], [], []>} : vector<8x16xbf16>, vector<16x8xbf16>, vector<8x8xf32> -> vector<8x8xf32>
    %c0_28 = arith.constant 0 : index
    %c8_29 = arith.constant 8 : index
    %49 = vector.load %arg14[%c0_28, %c8_29] : memref<8x32xf32, #tpu.memory_space<vmem>>, vector<8x8xf32>
    tpu.vector_store %arg14[%c0_28, %c8_29], %48 {strides = array<i32>} : memref<8x32xf32, #tpu.memory_space<vmem>>, vector<8x8xf32>,
    %50 = vector.extract_strided_slice %10 {offsets = [0, 16], sizes = [8, 8], strides = [1, 1]} : vector<8x32xbf16> to vector<8x8xbf16>
    %c0_30 = arith.constant 0 : index
    %c16 = arith.constant 16 : index
    %51 = vector.load %arg12[%c0_30, %c16] : memref<16x32xbf16, #tpu.memory_space<vmem>>, vector<16x8xbf16>
    %c0_31 = arith.constant 0 : index
    %c16_32 = arith.constant 16 : index
    %52 = vector.load %arg13[%c0_31, %c16_32] : memref<16x32xbf16, #tpu.memory_space<vmem>>, vector<16x8xbf16>
    %cst_33 = arith.constant dense<0.000000e+00> : vector<8x16xf32>
    %53 = tpu.matmul %50, %51, %cst_33 {dimension_numbers = #tpu.dot_dimension_numbers<[1], [1], [0], [0], [0, 0, 1, 0], [], []>} : vector<8x8xbf16>, vector<16x8xbf16>, vector<8x16xf32> -> vector<8x16xf32>
    %54 = arith.addf %53, %13 : vector<8x16xf32>
    %cst_34 = arith.constant dense<0xFF800000> : vector<8xf32>
    %55 = vector.multi_reduction <maximumf>, %54, %cst_34 [1] : vector<8x16xf32> to vector<8xf32>
    %56 = vector.shape_cast %55 : vector<8xf32> to vector<8x1xf32>
    %57 = vector.broadcast %56 : vector<8x1xf32> to vector<8x16xf32>
    %58 = arith.subf %54, %57 : vector<8x16xf32>
    %59 = math.exp %58 : vector<8x16xf32>
    %cst_35 = arith.constant dense<0.000000e+00> : vector<8xf32>
    %60 = vector.multi_reduction <add>, %59, %cst_35 [1] : vector<8x16xf32> to vector<8xf32>
    %61 = vector.shape_cast %60 : vector<8xf32> to vector<8x1xf32>
    %62 = tpu.reciprocal %61 {approx = true} : vector<8x1xf32> -> vector<8x1xf32>
    %63 = vector.broadcast %62 : vector<8x1xf32> to vector<8x16xf32>
    %64 = arith.mulf %59, %63 : vector<8x16xf32>
    %65 = arith.truncf %64 : vector<8x16xf32> to vector<8x16xbf16>
    %cst_36 = arith.constant dense<0.000000e+00> : vector<8x8xf32>
    %66 = tpu.matmul %65, %52, %cst_36 {dimension_numbers = #tpu.dot_dimension_numbers<[1], [0], [0], [1], [0, 0, 1, 1], [], []>} : vector<8x16xbf16>, vector<16x8xbf16>, vector<8x8xf32> -> vector<8x8xf32>
    %c0_37 = arith.constant 0 : index
    %c16_38 = arith.constant 16 : index
    %67 = vector.load %arg14[%c0_37, %c16_38] : memref<8x32xf32, #tpu.memory_space<vmem>>, vector<8x8xf32>
    tpu.vector_store %arg14[%c0_37, %c16_38], %66 {strides = array<i32>} : memref<8x32xf32, #tpu.memory_space<vmem>>, vector<8x8xf32>,
    %68 = vector.extract_strided_slice %10 {offsets = [0, 24], sizes = [8, 8], strides = [1, 1]} : vector<8x32xbf16> to vector<8x8xbf16>
    %c0_39 = arith.constant 0 : index
    %c24 = arith.constant 24 : index
    %69 = vector.load %arg12[%c0_39, %c24] : memref<16x32xbf16, #tpu.memory_space<vmem>>, vector<16x8xbf16>
    %c0_40 = arith.constant 0 : index
    %c24_41 = arith.constant 24 : index
    %70 = vector.load %arg13[%c0_40, %c24_41] : memref<16x32xbf16, #tpu.memory_space<vmem>>, vector<16x8xbf16>
    %cst_42 = arith.constant dense<0.000000e+00> : vector<8x16xf32>
    %71 = tpu.matmul %68, %69, %cst_42 {dimension_numbers = #tpu.dot_dimension_numbers<[1], [1], [0], [0], [0, 0, 1, 0], [], []>} : vector<8x8xbf16>, vector<16x8xbf16>, vector<8x16xf32> -> vector<8x16xf32>
    %72 = arith.addf %71, %13 : vector<8x16xf32>
    %cst_43 = arith.constant dense<0xFF800000> : vector<8xf32>
    %73 = vector.multi_reduction <maximumf>, %72, %cst_43 [1] : vector<8x16xf32> to vector<8xf32>
    %74 = vector.shape_cast %73 : vector<8xf32> to vector<8x1xf32>
    %75 = vector.broadcast %74 : vector<8x1xf32> to vector<8x16xf32>
    %76 = arith.subf %72, %75 : vector<8x16xf32>
    %77 = math.exp %76 : vector<8x16xf32>
    %cst_44 = arith.constant dense<0.000000e+00> : vector<8xf32>
    %78 = vector.multi_reduction <add>, %77, %cst_44 [1] : vector<8x16xf32> to vector<8xf32>
    %79 = vector.shape_cast %78 : vector<8xf32> to vector<8x1xf32>
    %80 = tpu.reciprocal %79 {approx = true} : vector<8x1xf32> -> vector<8x1xf32>
    %81 = vector.broadcast %80 : vector<8x1xf32> to vector<8x16xf32>
    %82 = arith.mulf %77, %81 : vector<8x16xf32>
    %83 = arith.truncf %82 : vector<8x16xf32> to vector<8x16xbf16>
    %cst_45 = arith.constant dense<0.000000e+00> : vector<8x8xf32>
    %84 = tpu.matmul %83, %70, %cst_45 {dimension_numbers = #tpu.dot_dimension_numbers<[1], [0], [0], [1], [0, 0, 1, 1], [], []>} : vector<8x16xbf16>, vector<16x8xbf16>, vector<8x8xf32> -> vector<8x8xf32>
    %c0_46 = arith.constant 0 : index
    %c24_47 = arith.constant 24 : index
    %85 = vector.load %arg14[%c0_46, %c24_47] : memref<8x32xf32, #tpu.memory_space<vmem>>, vector<8x8xf32>
    tpu.vector_store %arg14[%c0_46, %c24_47], %84 {strides = array<i32>} : memref<8x32xf32, #tpu.memory_space<vmem>>, vector<8x8xf32>,
    %c0_48 = arith.constant 0 : index
    %c0_49 = arith.constant 0 : index
    %86 = vector.load %arg14[%c0_48, %c0_49] : memref<8x32xf32, #tpu.memory_space<vmem>>, vector<8x32xf32>
    %c0_50 = arith.constant 0 : index
    %c0_51 = arith.constant 0 : index
    %c0_52 = arith.constant 0 : index
    %87 = vector.load %arg11[%c0_50, %c0_51, %c0_52] : memref<1x8x32xf32, #tpu.memory_space<vmem>>, vector<1x8x32xf32>
    %88 = vector.shape_cast %87 : vector<1x8x32xf32> to vector<8x32xf32>
    %89 = vector.shape_cast %86 : vector<8x32xf32> to vector<1x8x32xf32>
    tpu.vector_store %arg11[%c0_50, %c0_51, %c0_52], %89 {strides = array<i32>} : memref<1x8x32xf32, #tpu.memory_space<vmem>>, vector<1x8x32xf32>,
    return
  }
  func.func @transform_0(%arg0: i32, %arg1: i32) -> (i32, i32, i32) {
    %c0_i32 = arith.constant 0 : i32
    %c0_i32_0 = arith.constant 0 : i32
    return %arg0, %arg1, %c0_i32 : i32, i32, i32
  }
  func.func @transform_1(%arg0: i32, %arg1: i32) -> (i32, i32, i32) {
    %c0_i32 = arith.constant 0 : i32
    %c0_i32_0 = arith.constant 0 : i32
    %c0_i32_1 = arith.constant 0 : i32
    return %arg0, %c0_i32, %c0_i32_0 : i32, i32, i32
  }
  func.func @transform_2(%arg0: i32, %arg1: i32) -> (i32, i32, i32, i32) {
    %c0_i32 = arith.constant 0 : i32
    %c0_i32_0 = arith.constant 0 : i32
    %c0_i32_1 = arith.constant 0 : i32
    return %arg0, %c0_i32, %arg1, %c0_i32_0 : i32, i32, i32, i32
  }
  func.func @transform_3(%arg0: i32, %arg1: i32) -> (i32, i32) {
    %c0_i32 = arith.constant 0 : i32
    %c0_i32_0 = arith.constant 0 : i32
    %c0_i32_1 = arith.constant 0 : i32
    return %c0_i32, %c0_i32_0 : i32, i32
  }
  func.func @transform_4(%arg0: i32, %arg1: i32) -> (i32, i32) {
    %c0_i32 = arith.constant 0 : i32
    %c0_i32_0 = arith.constant 0 : i32
    %c0_i32_1 = arith.constant 0 : i32
    return %c0_i32, %c0_i32_0 : i32, i32
  }
  func.func @transform_5(%arg0: i32, %arg1: i32) -> (i32, i32) {
    %c0_i32 = arith.constant 0 : i32
    %c0_i32_0 = arith.constant 0 : i32
    %c0_i32_1 = arith.constant 0 : i32
    return %c0_i32, %c0_i32_0 : i32, i32
  }
  func.func @transform_6(%arg0: i32, %arg1: i32) -> (i32, i32) {
    %c0_i32 = arith.constant 0 : i32
    %c0_i32_0 = arith.constant 0 : i32
    %c0_i32_1 = arith.constant 0 : i32
    return %c0_i32, %c0_i32_0 : i32, i32
  }
  func.func @transform_7(%arg0: i32, %arg1: i32) -> (i32, i32) {
    %c0_i32 = arith.constant 0 : i32
    %c0_i32_0 = arith.constant 0 : i32
    %c0_i32_1 = arith.constant 0 : i32
    return %c0_i32, %c0_i32_0 : i32, i32
  }
  func.func @transform_8(%arg0: i32, %arg1: i32) -> (i32, i32) {
    %c0_i32 = arith.constant 0 : i32
    %c0_i32_0 = arith.constant 0 : i32
    %c0_i32_1 = arith.constant 0 : i32
    return %c0_i32, %c0_i32_0 : i32, i32
  }
  func.func @transform_9(%arg0: i32, %arg1: i32) -> (i32, i32, i32) {
    %c0_i32 = arith.constant 0 : i32
    %c0_i32_0 = arith.constant 0 : i32
    return %arg0, %arg1, %c0_i32 : i32, i32, i32
  }
}

</mosaic_0001>

<bundles_post_ra>
// kernel: tpu_custom_call.1
= control target key start
LH: loop header
LB: loop body
LE: loop exit
PB: predicated region body
PF: predicated region fallthrough
CT: control target
= control target key end

     0   :  { %s1932_s0 = inlined_call_operand.hbm [shape: bf16[2,8,32], index: 0, kind: input, shape index: {}]   ;;  %s1933_s1 = inlined_call_operand.hbm [shape: bf16[2,16,32], index: 1, kind: input, shape index: {}]   ;;  %s1934_s2 = inlined_call_operand.hbm [shape: bf16[2,1,8,16], index: 2, kind: input, shape index: {}]   ;;  %s1935_s3 = inlined_call_operand.hbm [shape: bf16[32,32], index: 3, kind: input, shape index: {}]   ;;  %s1936_s4 = inlined_call_operand.vmem [shape: f32[1,32], index: 4, kind: input, shape index: {}]   ;;  %s1937_s5 = inlined_call_operand.hbm [shape: bf16[32,32], index: 5, kind: input, shape index: {}]   ;;  %s1938_s6 = inlined_call_operand.vmem [shape: f32[1,32], index: 6, kind: input, shape index: {}]   ;;  %s1939_s7 = inlined_call_operand.hbm [shape: bf16[32,32], index: 7, kind: input, shape index: {}]   ;;  %s1940_s8 = inlined_call_operand.vmem [shape: f32[1,32], index: 8, kind: input, shape index: {}]   ;;  %s1941_s9 = inlined_call_operand.hbm [shape: f32[2,8,32], index: 9, kind: output, shape index: {}]  }
   0x1   :  { %1955 = sst [smem:[#allocation29_spill]] %s1933_s1 }
   0x2   :  { %1956 = sst [smem:[#allocation30_spill]] %s1935_s3 }
   0x3   :  { %1957 = sst [smem:[#allocation31_spill]] %s1937_s5 }
   0x4   :  { %1958 = sst [smem:[#allocation32_spill]] %s1941_s9 }
   0x5   :  { %14 = vsyncpa [#allocation6], 0 }
   0x6   :  { %16 = vsyncpa [#allocation6 + $0x1], 0 }
   0x7   :  { %17 = vsyncpa [#allocation9], 0 }
   0x8   :  { %19 = vsyncpa [#allocation9 + $0x1], 0 }
   0x9   :  { %20 = vsyncpa [#allocation12], 0 }
   0xa   :  { %21 = vsyncpa [#allocation15], 0 }
   0xb   :  { %22 = vsyncpa [#allocation7], 0 }
   0xc   :  { %24 = vsyncpa [#allocation7 + $0x1], 0  ;;  %s1674_s30 = smov 0   ;;  %s1676_s10 = smov 0  }
   0xd   :  { %s1678_s11 = smov 0   ;;  %s1680_s12 = smov 0  }
   0xe   :  { %s1682_s13 = smov 0   ;;  %s1684_s14 = smov 0  }
   0xf LB: > { %1959 = sst [smem:[#allocation22_spill]] %s1591_s30  ;;  %s1705_s15 = sadd.s32 4294967295, %s1611_s14   ;;  %s1611_s14 = sphi %s1684_s14, %s30_s14   ;;  %s1607_s13 = sphi %s1682_s13, %s1989_s13   ;;  %s1603_s12 = sphi %s1680_s12, %s1988_s12   ;;  %s1599_s11 = sphi %s1678_s11, %s1984_s11   ;;  %s1595_s10 = sphi %s1676_s10, %s1987_s10   ;;  %s1591_s30 = sphi %s1674_s30, %s1986_s30  }
  0x10   : > { %1960 = sst [smem:[#allocation23_spill]] %s1599_s11  ;;  %s1095_s16 = sadd.s32 4294967294, %s1611_s14  }
  0x11   : > { %1961 = sst [smem:[#allocation24_spill]] %s1611_s14  ;;  %p64_p0 = scmp.ne.s32.totalorder %s1595_s10, %s1591_s30 }
  0x12   : > { %p65_p1 = scmp.eq.s32.totalorder %s1705_s15, 0  ;;  %p270_p2 = scmp.eq.s32.totalorder %s1705_s15, 1 }
  0x13   : > { %p276_p3 = scmp.eq.s32.totalorder %s1095_s16, 1  ;;  %p1096_p5 = scmp.ge.s32.totalorder %s1611_s14, 1 }
  0x14   : > { %p1714_p4 = por %p65_p1, %p64_p0  ;;  %p283_p7 = scmp.lt.s32.totalorder %s1611_s14, 3 }
  0x15   : > { %p1719_p6 = por %p276_p3, %p64_p0  ;;  %s1965_s3 = sld [smem:[#allocation30_spill]] }
  0x16   : > { %p1727_p8 = pnand %p1096_p5, %p283_p7  ;;  %s1613_s23 = smov [#allocation11]  }
  0x17   : > { %s1963_s18 = scalar_select %p1719_p6, 1, 0 }
  0x18   : > { %p1227_p9 = pneg %p1727_p8  ;;  %s296_s24 = sshll.u32 %s1613_s23, 4  ;;  %s297_s24 = int_to_ptr.vmem [resolvable:$true] %s296_s24 }
  0x19   : > { %1964 = sst [smem:[#allocation25_spill]] %s1963_s18  ;;  %s1942_s26 = smov 64  }
  0x1a   : > { %p1735_p10 = pnand %p1227_p9, %p65_p1  ;;  %s1944_s27 = smov 4  }
  0x1b   : > { %s294_s21 = sshll.u32 %s1965_s3, 4  ;;  %s42_s28 = sadd.s32 1, %s1607_s13  ;;  %s295_s21 = int_to_ptr.hbm [resolvable:$true] %s294_s21 }
  0x1c   : > { %1230 = dma.hbm_to_vmem [thread:$0]  (!%p1735_p10), %s295_s21, 256, %s297_s24, [#allocation12], %s1942_s26, %s1942_s26, %s1944_s27  }
  0x1d   : > { %p44_p12 = scmp.ge.s32.totalorder %s42_s28, 2  ;;  %s51_s29 = sadd.s32 1, %s1599_s11 }
  0x1e   : > { %p58_p13 = scmp.ne.s32.totalorder %s1599_s11, %s1595_s10  ;;  %p59_p0 = scmp.eq.s32.totalorder %s1611_s14, 0 }
  0x1f   : > { %s1991_s28 = smov (%p44_p12, %s42_s28), 0  ;;  %p1254_p7 = scmp.lt.s32.totalorder %s1611_s14, 2 }
  0x20   : > { %1968 = sst [smem:[#allocation26_spill]] %s1991_s28  ;;  %p60_p3 = por %p59_p0, %p58_p13 }
  0x21   : > { %p1754_p5 = por %p270_p2, %p58_p13  ;;  %s46_s19 = ssub.s32 %s1607_s13, %s1991_s28 }
  0x22   : > { %p49_p9 = scmp.eq.s32.totalorder %s46_s19, 0  ;;  %s1762_s20 = sand.u32 1, %s1599_s11  }
  0x23   : > { %s1969_s16 = scalar_select %p1754_p5, 1, 0 }
  0x24   : > { %p1764_p11 = pnand %p1254_p7, %p60_p3  ;;  %s367_s23 = sand.u32 1, %s1611_s14  }
  0x25   : > { %1970 = sst [smem:[#allocation27_spill]] %s1969_s16  ;;  %s1103_s26 = sshll.u32 %s1762_s20, 3 }
  0x26   : > { %s1770_s24 = scalar_select %p49_p9, %s1599_s11, %s51_s29  }
  0x27   : > { %s1191_s27 = sshll.u32 %s1607_s13, 3  ;;  %s1973_s1 = sld [smem:[#allocation29_spill]] }
  0x28   : > { %1972 = sst [smem:[#allocation28_spill]] %s1770_s24  ;;  %s371_s19 = scalar_lea.vmem [#allocation8], %s1103_s26 }
  0x29   : > { %s379_s9 = sshll.u32 %s371_s19, 4  ;;  %s1777_s16 = scalar_lea.sflag [#allocation9], %s367_s23  ;;  %s380_s9 = int_to_ptr.vmem [resolvable:$true] %s379_s9 }
  0x2a   : > { %s1974_s29 = smov 4   ;;  %s1975_s24 = smov 64  }
  0x2b   : > { %s1976_s5 = sld [smem:[#allocation31_spill]]  ;;  %s1616_s18 = smov [#allocation13]  }
  0x2c   : > { %s313_s26 = sshll.u32 %s1616_s18, 4  ;;  %s328_s23 = sshll.u32 %s1939_s7, 4  ;;  %s314_s26 = int_to_ptr.vmem [resolvable:$true] %s313_s26  ;;  %s329_s23 = int_to_ptr.hbm [resolvable:$true] %s328_s23 }
  0x2d   : > { %s376_s28 = scalar_lea.hbm %s1973_s1, %s1191_s27  ;;  %s1101_s11 = sshll.u32 %s1762_s20, 2 }
  0x2e   : > { %s377_s30 = sshll.u32 %s376_s28, 4  ;;  %s1102_s14 = sshll.u32 %s1607_s13, 2  ;;  %s378_s30 = int_to_ptr.hbm [resolvable:$true] %s377_s30 }
  0x2f   : > { %1243 = dma.hbm_to_vmem [thread:$0]  (!%p1764_p11), %s378_s30, 128, %s380_s9, %s1777_s16, %s1975_s24, %s1975_s24, %s1974_s29  }
  0x30   : > { %s1617_s9 = smov [#allocation14]   ;;  %s356_s27 = scalar_lea.hbm %s1932_s0, %s1102_s14 }
  0x31   : > { %s311_s3 = sshll.u32 %s1976_s5, 4  ;;  %s330_s30 = sshll.u32 %s1617_s9, 4  ;;  %s312_s3 = int_to_ptr.hbm [resolvable:$true] %s311_s3  ;;  %s331_s30 = int_to_ptr.vmem [resolvable:$true] %s330_s30 }
  0x32   : > { %1233 = dma.hbm_to_vmem [thread:$0]  (!%p1735_p10), %s312_s3, 256, %s314_s26, [#allocation12], %s1975_s24, %s1975_s24, %s1974_s29  }
  0x33   : > { %1236 = dma.hbm_to_vmem [thread:$0]  (!%p1735_p10), %s329_s23, 256, %s331_s30, [#allocation15], %s1975_s24, %s1975_s24, %s1974_s29  }
  0x34   : > { %s351_s28 = scalar_lea.vmem [#allocation5], %s1101_s11  ;;  %s358_s3 = sshll.u32 %s356_s27, 4  ;;  %s359_s3 = int_to_ptr.hbm [resolvable:$true] %s358_s3 }
  0x35   : > { %s360_s1 = sshll.u32 %s351_s28, 4  ;;  %s348_s26 = scalar_lea.sflag [#allocation6], %s1762_s20  ;;  %s361_s1 = int_to_ptr.vmem [resolvable:$true] %s360_s1 }
  0x36   : > { %1240 = dma.hbm_to_vmem [thread:$0]  (!%p1764_p11), %s359_s3, 64, %s361_s1, %s348_s26  }
  0x37   : > { %s398_s5 = scalar_lea.hbm %s1934_s2, %s1102_s14  ;;  %s393_s24 = scalar_lea.vmem [#allocation10], %s1101_s11 }
  0x38   : > { %s402_s29 = sshll.u32 %s393_s24, 4  ;;  %s400_s23 = sshll.u32 %s398_s5, 4  ;;  %s403_s29 = int_to_ptr.vmem [resolvable:$true] %s402_s29  ;;  %s401_s23 = int_to_ptr.hbm [resolvable:$true] %s400_s23 }
  0x39   : > { %1246 = dma.hbm_to_vmem [thread:$0]  (!%p1764_p11), %s401_s23, 64, %s403_s29, %s1777_s16  }
  0x3a   : > { %411 = sbr.rel (%p1727_p8) target bundleno = 1026 (0x402), region = 56  ;;  %s1818_s30 = sand.u32 (!%p1727_p8), 1, %s1595_s10  }
  0x3b   : > { %s1109_s1 = sshll.u32 (!%p1727_p8), %s1818_s30, 2  ;;  %s414_s20 = scalar_lea.sflag (!%p1727_p8), [#allocation6], %s1818_s30 }
  0x3c   : > { %s417_s19 = scalar_lea.vmem (!%p1727_p8), [#allocation5], %s1109_s1 }
  0x3f   : > { %1570 = dma.done.wait (%p1714_p4), %s414_s20, 64  }
  0x40   : > { %1572 = vsyncadd (%p1714_p4), %s414_s20, 4294967232  ;;  %s423_s5 = sand.u32 1, %s1705_s15   ;;  %s1110_s22 = sshll.u32 %s1818_s30, 3 }
  0x41   : > { %s424_s16 = scalar_lea.sflag [#allocation9], %s423_s5  ;;  %s427_s21 = scalar_lea.vmem [#allocation8], %s1110_s22 }
  0x42   : > { %1574 = dma.done.wait (%p1714_p4), %s424_s16, 192  }
  0x43   : > { %1576 = vsyncadd (%p1714_p4), %s424_s16, 4294967104  ;;  %s1834_s11 = scalar_lea.vmem [#allocation10], %s1109_s1 }
  0x44   : > { %1578 = dma.done.wait (%p65_p1), [#allocation12], 512  }
  0x45   : > { %1580 = vsyncadd (%p65_p1), [#allocation12], 4294966784 }
  0x46   : > { %1582 = dma.done.wait (%p65_p1), [#allocation15], 256  }
  0x47   : > { %1584 = vsyncadd (%p65_p1), [#allocation15], 4294967040  ;;  %v1194_v0 = vld [vmem:[#allocation13 + $0x8] sm:$0xff]  ;;  %v1198_v1 = vld [vmem:[#allocation11 + $0x8] sm:$0xff]  ;;  %vm530_vm0 = vcmask 261120   ;;  %vm584_vm1 = vcmask 257024  }
  0x48   : > { %540 = vmatpush.bf16.msra.mxu0 %v1194_v0  ;;  %v1193_v2 = vld [vmem:[#allocation13] sm:$0xff]  ;;  %622 = vmatpush.bf16.msra.mxu2 %v1198_v1  ;;  %v1197_v3 = vld [vmem:[#allocation11] sm:$0xff]  ;;  %v1318_v6 = vld [vmem:[%s1938_s6] ss:$0 sm:$0xff]  ;;  %s1618_s27 = smov 112   ;;  %vm641_vm2 = vcmask 64512  }
  0x49   : > { %v1192_v4 = vld [vmem:[%s427_s21] sm:$0xff]  ;;  %v591_v5 = vld [vmem:[%s417_s19] sm:$0xf]  ;;  %s1619_s28 = smov 120   ;;  %s1620_s3 = smov 104   ;;  %vm661_vm3 = vcmask 130048  }
  0x4a   : > { %v1319_v10 = vld [vmem:[%s1936_s4] ss:$0 sm:$0xff]  ;;  %v1195_v26 = vld [vmem:[#allocation14] sm:$0xff]  ;;  %v630_v35 = vld [vmem:[%s1834_s11] sm:$0xf]  ;;  %s1621_s9 = smov 8  }
  0x4b   : > { %v1196_v25 = vld [vmem:[#allocation14 + $0x8] sm:$0xff]  ;;  %v631_v36 = vunpack.c.l.bf16 %v630_v35  ;;  %s1622_s24 = smov 24   ;;  %s1623_s29 = smov 16   ;;  %vm772_vm4 = vcmask 130112   ;;  %vm846_vm5 = vcmask 195712   ;;  %vm920_vm6 = vcmask 261312  }
  0x4c   : > { %541 = vmatpush.bf16.msra.mxu0 %v1193_v2  ;;  %623 = vmatpush.bf16.msra.mxu2 %v1197_v3  ;;  %v1320_v42 = vld [vmem:[%s1940_s8] ss:$0 sm:$0xff]  ;;  %s1188_s23 = sshll.u32 %s1603_s12, 3  ;;  %s1978_s5 = sld [smem:[#allocation32_spill]] }
  0x4d   : > { %574 = vmatpush.bf16.msra.mxu1 %v1196_v25  ;;  %s497_s21 = scalar_lea.vmem [#allocation16], %s1110_s22  ;;  %s925_s14 = scalar_lea.sflag [#allocation7], %s1818_s30 }
  0x4e   : > { %s938_s11 = sshll.u32 %s497_s21, 4  ;;  %s939_s11 = int_to_ptr.vmem [resolvable:$true] %s938_s11 }
  0x4f   : > { %1128 = vmatmul.msk.bf16.vlgmr.msra.gmra.mxu0 %vm530_vm0, %v1192_v4  ;;  %1146 = vmatmul.msk.bf16.vlgmr.msra.gmra.mxu2 %vm530_vm0, %v591_v5 }
  0x51   : > { %575 = vmatpush.bf16.msra.mxu1 %v1195_v26 }
  0x52   : > { %s936_s16 = scalar_lea.hbm %s1978_s5, %s1188_s23 }
  0x53   : > { %s940_s17 = sshll.u32 %s936_s16, 4  ;;  %s941_s17 = int_to_ptr.hbm [resolvable:$true] %s940_s17 }
  0x54   : > { %1137 = vmatmul.msk.bf16.vlgmr.msra.gmra.mxu1 %vm530_vm0, %v1192_v4  ;;  %s1531_s12 = sshra.s32 %s941_s17, 4  ;;  %s1532_s12 = int_to_ptr.hbm [resolvable:$true] %s1531_s12 }
  0x55   : > { %s1533_s15 = scalar_lea.hbm %s1532_s12, 8  ;;  %p1538_p8 = scmp.lt.s32.totalorder %s1532_s12, %s1978_s5 }
  0x56   : > { %p1534_p1 = scmp.ne.s32.totalorder %s1532_s12, %s1533_s15 }
  0x58   : > { %p1535_p2 = pnand %p1534_p1, %p1754_p5 }
  0x5a   : > { %p1536_p4 = pneg %p1535_p2 }
  0xcc   : > { %v543_v7 = vpop.f32.mrf.mxu0 }
  0xcd   : > { %v544_v8 = vadd.f32 %v1318_v6, %v543_v7 }
  0xcf   : > { %v582_v9 = vpack.c.bf16 %v544_v8, %v544_v8 }
  0xd1   : > { %585 = vst.msk [vmem:[#allocation2] sm:$0xf] %vm584_vm1, %v582_v9  ;;  %v577_v43 = vpop.f32.mrf.mxu1 }
  0xd2   : > { %v625_v11 = vpop.f32.mrf.mxu2  ;;  %v578_v44 = vadd.f32 %v1320_v42, %v577_v43 }
  0xd3   : > { %v626_v13 = vadd.f32 %v1319_v10, %v625_v11 }
  0xd4   : > { %v545_v12 = vpop.f32.mrf.mxu0  ;;  %v587_v45 = vpack.c.bf16 %v578_v44, %v578_v44 }
  0xd5   : > { %v546_v14 = vadd.f32 %v1318_v6, %v545_v12  ;;  %v629_v15 = vpack.c.bf16 %v626_v13, %v626_v13 }
  0xd6   : > { %589 = vst.msk [vmem:[#allocation3] sm:$0xf] %vm584_vm1, %v587_v45 }
  0xd7   : > { %v583_v16 = vpack.c.bf16 %v546_v14, %v546_v14  ;;  %v702_v17 = vunpack.c.l.b16 %v629_v15 }
  0xd9   : > { %586 = vst.msk [vmem:[#allocation2 + $0x4] sm:$0xf] %vm584_vm1, %v583_v16  ;;  %v703_v18 = vpack.c.b16 %v702_v17, %v702_v17  ;;  %v579_v46 = vpop.f32.mrf.mxu1 }
  0xda   : > { %v627_v19 = vpop.f32.mrf.mxu2  ;;  %v580_v47 = vadd.f32 %v1320_v42, %v579_v46 }
  0xdb   : > { %778 = vrot.lane.b32.xlu2 %v703_v18, %s1618_s27 }
  0xdc   : > { %v588_v48 = vpack.c.bf16 %v580_v47, %v580_v47 }
  0xde   : > { %590 = vst.msk [vmem:[#allocation3 + $0x4] sm:$0xf] %vm584_vm1, %v588_v48 }
  0xe0   : > { %v1203_v20 = vld [vmem:[#allocation2] sm:$0xff] }
  0xe1   : > { %v1201_v21 = vld [vmem:[#allocation2] sm:$0xff]  ;;  %785 = vrot.lane.b32.xlu1 %v1203_v20, %s1618_s27 }
  0xe2   : > { %v1199_v22 = vld [vmem:[#allocation2] sm:$0xff]  ;;  %711 = vrot.lane.b32.xlu0 %v1201_v21, %s1619_s28 }
  0xe3   : > { %v646_v23 = vsel %vm641_vm2, %v1199_v22, 0  ;;  %852 = vrot.lane.b32.xlu2 %v703_v18, %s1620_s3  ;;  %v1205_v24 = vld [vmem:[#allocation2] sm:$0xff] }
  0xe4   : > { %655 = vmatpush.bf16.xpose.msra.mxu3 %v646_v23 }
  0xe5   : > { %v1200_v49 = vld [vmem:[#allocation3] sm:$0xff] }
  0xe6   : > { %690 = vmatpush.bf16.msrb.mxu0 %v1200_v49  ;;  %v1202_v3 = vld [vmem:[#allocation3] sm:$0xff] }
  0xe7   : > { %v1204_v25 = vld [vmem:[#allocation3] sm:$0xff] }
  0xe9   : > { %859 = vrot.lane.b32.xlu1 %v1205_v24, %s1620_s3  ;;  %v1206_v24 = vld [vmem:[#allocation3] sm:$0xff] }
  0xea   : > { %704 = vrot.lane.b32.xlu0 %v703_v18, %s1619_s28 }
  0xeb   : > { %1151 = vmatmul.msk.bf16.vlgmr.msra.gmra.mxu3 %vm641_vm2, %v629_v15 }
 0x135   : > { %v779_v31 = vpop.permute.xlu2 %778 }
 0x13d   : > { %v853_v37 = vpop.permute.xlu2 %852 }
 0x153   : > { %v786_v27 = vpop.permute.xlu1 %785 }
 0x154   : > { %v712_v28 = vpop.permute.xlu0 %711  ;;  %v791_v30 = vsel %vm641_vm2, %v786_v27, 0 }
 0x155   : > { %v717_v29 = vsel %vm641_vm2, %v712_v28, 0  ;;  %800 = vmatpush.bf16.xpose.msrb.mxu3 %v791_v30 }
 0x156   : > { %726 = vmatpush.bf16.xpose.msrb.mxu1 %v717_v29 }
 0x15b   : > { %v860_v32 = vpop.permute.xlu1 %859 }
 0x15c   : > { %v705_v33 = vpop.permute.xlu0 %704  ;;  %v865_v34 = vsel %vm641_vm2, %v860_v32, 0  ;;  %1171 = vmatmul.msk.bf16.vlgmr.msrb.gmra.mxu3 %vm641_vm2, %v779_v31 }
 0x15d   : > { %1161 = vmatmul.msk.bf16.vlgmr.msrb.gmra.mxu1 %vm641_vm2, %v705_v33 }
 0x15e   : > { %874 = vmatpush.bf16.xpose.msra.mxu1 %v865_v34 }
 0x16d   : > { %1181 = vmatmul.msk.bf16.vlgmr.msra.gmra.mxu1 %vm641_vm2, %v853_v37 }
 0x16e   : > { %v657_v38 = vpop.f32.mrf.mxu3 }
 0x16f   : > { %v658_v39 = vadd.f32 %v657_v38, %v631_v36 }
 0x171   : > { %v662_v40 = vsel %vm661_vm3, %v658_v39, -inf }
 0x172   : > { %663 = vmax.xlane.f32.xlu1 %v662_v40 }
 0x176   : > { %v659_v41 = vpop.f32.mrf.mxu3 }
 0x1da   : > { %v728_v50 = vpop.f32.mrf.mxu1 }
 0x1db   : > { %v729_v51 = vadd.f32 %v728_v50, %v631_v36 }
 0x1dd   : > { %v732_v52 = vsel %vm661_vm3, %v729_v51, -inf }
 0x1de   : > { %733 = vmax.xlane.f32.xlu0 %v732_v52 }
 0x1df   : > { %v802_v53 = vpop.f32.mrf.mxu3 }
 0x1e0   : > { %v803_v63 = vadd.f32 %v802_v53, %v631_v36 }
 0x1e2   : > { %v730_v54 = vpop.f32.mrf.mxu1  ;;  %v806_v2 = vsel %vm661_vm3, %v803_v63, -inf }
 0x1e5   : > { %v664_v55 = vpop.xlane.xlu1 %663 }
 0x1e6   : > { %v665_v56 = vsub.f32 %v658_v39, %v664_v55 }
 0x1e7   : > { %v804_v58 = vpop.f32.mrf.mxu3 }
 0x1e8   : > { %v666_v57 = vmul.f32 1.442695, %v665_v56 }
 0x1ea   : > { %1321 = vpow2.f32 %v666_v57  ;;  %v876_v59 = vpop.f32.mrf.mxu1 }
 0x1eb   : > { %v877_v60 = vadd.f32 %v876_v59, %v631_v36 }
 0x1ed   : > { %v880_v61 = vsel %vm661_vm3, %v877_v60, -inf }
 0x1ee   : > { %881 = vmax.xlane.f32.xlu2 %v880_v61 }
 0x1f0   : > { %v1322_v62 = vpop.eup %1321 }
 0x1f1   : > { %v668_v0 = vsel %vm661_vm3, %v1322_v62, 0.0 }
 0x1f2   : > { %669 = vadd.xlane.f32.xlu1 %v668_v0  ;;  %v878_v1 = vpop.f32.mrf.mxu1 }
 0x1f6   : > { %807 = vmax.xlane.f32.xlu2 %v806_v2 }
 0x20e   : > { %749 = vrot.lane.b32.xlu2 %v1202_v3, %s1619_s28  ;;  %s1537_s28 = scalar_lea.hbm %s1978_s5, 16 }
 0x20f   : > { %p1539_p10 = scmp.lt.s32.totalorder %s1537_s28, %s1533_s15 }
 0x211   : > { %p1540_p11 = por %p1539_p10, %p1538_p8 }
 0x213   : > { %p1541_p12 = pnand %p1540_p11, %p1536_p4 }
 0x251   : > { %v734_v4 = vpop.xlane.xlu0 %733 }
 0x252   : > { %v735_v5 = vsub.f32 %v729_v51, %v734_v4 }
 0x254   : > { %v736_v6 = vmul.f32 1.442695, %v735_v5 }
 0x256   : > { %1323 = vpow2.f32 %v736_v6 }
 0x25c   : > { %v1324_v7 = vpop.eup %1323 }
 0x25d   : > { %v738_v8 = vsel %vm661_vm3, %v1324_v7, 0.0 }
 0x25e   : > { %739 = vadd.xlane.f32.xlu0 %v738_v8 }
 0x261   : > { %v882_v9 = vpop.xlane.xlu2 %881 }
 0x262   : > { %v883_v10 = vsub.f32 %v877_v60, %v882_v9 }
 0x264   : > { %v884_v11 = vmul.f32 1.442695, %v883_v10 }
 0x265   : > { %v670_v12 = vpop.xlane.xlu1 %669 }
 0x266   : > { %1325 = vpow2.f32 %v884_v11 }
 0x267   : > { %1327 = vrcp.f32 %v670_v12 }
 0x269   : > { %v808_v13 = vpop.xlane.xlu2 %807 }
 0x26a   : > { %v809_v14 = vsub.f32 %v803_v63, %v808_v13 }
 0x26c   : > { %v1326_v15 = vpop.eup %1325  ;;  %v810_v16 = vmul.f32 1.442695, %v809_v14 }
 0x26d   : > { %v1328_v17 = vpop.eup %1327  ;;  %v886_v18 = vsel %vm661_vm3, %v1326_v15, 0.0 }
 0x26e   : > { %v672_v19 = vmul.f32 %v1328_v17, %v1322_v62  ;;  %1329 = vpow2.f32 %v810_v16  ;;  %887 = vadd.xlane.f32.xlu0 %v886_v18 }
 0x270   : > { %v673_v20 = vpack.c.bf16 %v672_v19, %v672_v19 }
 0x271   : > { %v750_v21 = vpop.permute.xlu2 %749 }
 0x272   : > { %1156 = vmatmul.msk.bf16.vlgmr.msrb.gmra.mxu0 %vm661_vm3, %v673_v20  ;;  %762 = vmatpush.bf16.msrb.mxu2 %v750_v21 }
 0x274   : > { %v1330_v22 = vpop.eup %1329 }
 0x275   : > { %v812_v23 = vsel %vm661_vm3, %v1330_v22, 0.0 }
 0x276   : > { %813 = vadd.xlane.f32.xlu1 %v812_v23 }
 0x282   : > { %897 = vrot.lane.b32.xlu0 %v1206_v24, %s1620_s3 }
 0x28f   : > { %823 = vrot.lane.b32.xlu1 %v1204_v25, %s1618_s27 }
 0x2d1   : > { %v740_v26 = vpop.xlane.xlu0 %739 }
 0x2d2   : > { %1331 = vrcp.f32 %v740_v26 }
 0x2d8   : > { %v1332_v27 = vpop.eup %1331 }
 0x2d9   : > { %v742_v28 = vmul.f32 %v1332_v27, %v1324_v7 }
 0x2db   : > { %v743_v29 = vpack.c.bf16 %v742_v28, %v742_v28 }
 0x2dd   : > { %1166 = vmatmul.msk.bf16.vlgmr.msrb.gmra.mxu2 %vm661_vm3, %v743_v29 }
 0x2e1   : > { %v888_v30 = vpop.xlane.xlu0 %887 }
 0x2e2   : > { %1333 = vrcp.f32 %v888_v30 }
 0x2e8   : > { %v1334_v31 = vpop.eup %1333 }
 0x2e9   : > { %v890_v33 = vmul.f32 %v1334_v31, %v1326_v15  ;;  %v814_v34 = vpop.xlane.xlu1 %813 }
 0x2ea   : > { %1335 = vrcp.f32 %v814_v34 }
 0x2eb   : > { %v891_v36 = vpack.c.bf16 %v890_v33, %v890_v33 }
 0x2ef   : > { %v692_v32 = vpop.f32.mrf.mxu0 }
 0x2f0   : > { %696 = vst.msk [vmem:[#allocation4] sm:$0xff] %vm641_vm2, %v692_v32  ;;  %v1336_v38 = vpop.eup %1335 }
 0x2f1   : > { %v816_v39 = vmul.f32 %v1336_v38, %v1330_v22 }
 0x2f3   : > { %v817_v41 = vpack.c.bf16 %v816_v39, %v816_v39 }
 0x2f4   : > { %v898_v35 = vpop.permute.xlu0 %897 }
 0x2f5   : > { %910 = vmatpush.bf16.msra.mxu2 %v898_v35 }
 0x2f7   : > { %v694_v37 = vpop.f32.mrf.mxu0 }
 0x2f8   : > { %1186 = vmatmul.msk.bf16.vlgmr.msra.gmra.mxu2 %vm661_vm3, %v891_v36 }
 0x301   : > { %v824_v40 = vpop.permute.xlu1 %823 }
 0x302   : > { %836 = vmatpush.bf16.msra.mxu0 %v824_v40 }
 0x305   : > { %1176 = vmatmul.msk.bf16.vlgmr.msra.gmra.mxu0 %vm661_vm3, %v817_v41 }
 0x360   : > { %v764_v42 = vpop.f32.mrf.mxu2 }
 0x361   : > { %769 = vrot.lane.b32.xlu2 %v764_v42, %s1621_s9 }
 0x368   : > { %v766_v43 = vpop.f32.mrf.mxu2 }
 0x37b   : > { %v912_v44 = vpop.f32.mrf.mxu2 }
 0x37c   : > { %917 = vrot.lane.b32.xlu2 %v912_v44, %s1622_s24 }
 0x382   : > { %v838_v45 = vpop.f32.mrf.mxu0 }
 0x383   : > { %v914_v46 = vpop.f32.mrf.mxu2  ;;  %843 = vrot.lane.b32.xlu0 %v838_v45, %s1623_s29 }
 0x38a   : > { %v840_v47 = vpop.f32.mrf.mxu0 }
 0x3bb   : > { %v770_v48 = vpop.permute.xlu2 %769 }
 0x3bc   : > { %773 = vst.msk [vmem:[#allocation4] sm:$0xff] %vm772_vm4, %v770_v48 }
 0x3d6   : > { %v918_v50 = vpop.permute.xlu2 %917 }
 0x3f5   : > { %v844_v49 = vpop.permute.xlu0 %843 }
 0x3f6   : > { %847 = vst.msk [vmem:[#allocation4] sm:$0xff] %vm846_vm5, %v844_v49 }
 0x3f7   : > { %921 = vst.msk [vmem:[#allocation4] sm:$0xff] %vm920_vm6, %v918_v50 }
 0x3fe   : > { %v922_v51 = vld [vmem:[#allocation4] sm:$0xff] }
 0x3ff   : > { %923 = vst.msk [vmem:[%s497_s21] sm:$0xff] %vm530_vm0, %v922_v51 }
 0x400   : > { %1544 = shalt.err (!%p1541_p12)
}
 0x401   : > { %1225 = dma.vmem_to_hbm [thread:$0]  (%p1754_p5), %s939_s11, 128, %s941_s17, %s925_s14  }
 0x402 PF: > { %s1979_s30 = sld [smem:[#allocation22_spill]] }
 0x403   : > { %s1981_s25 = sld [smem:[#allocation24_spill]] }
 0x408   : > { %s952_s9 = sand.u32 1, %s1979_s30  }
 0x409   : > { %p1982_p13 = scmp.ge.s32.totalorder %s1981_s25, 2  ;;  %s953_s24 = scalar_lea.sflag [#allocation7], %s952_s9 }
 0x40b   : > { %p1248_p0 = pnand %p1982_p13, %p1719_p6 }
 0x40d   : > { %p1249_p3 = pneg %p1248_p0 }
 0x40f   : > { %1586 = dma.done.wait (%p1249_p3), %s953_s24, 128  }
 0x410   : > { %1588 = vsyncadd (%p1249_p3), %s953_s24, 4294967168  ;;  %s30_s14 = sadd.s32 1, %s1981_s25   ;;  %s1983_s29 = sld [smem:[#allocation23_spill]] }
 0x411   : > { %p27_p7 = scmp.ge.s32.totalorder %s30_s14, 4   ;;  %s1984_s11 = sld [smem:[#allocation28_spill]] }
 0x412   : > { %s1985_s23 = sld [smem:[#allocation26_spill]]  ;;  %s1986_s30 = smov %s1595_s10 }
 0x413   : > { %s1988_s12 = smov %s1607_s13 }
 0x414   :  { %29 = sbr.rel (!%p27_p7) target bundleno = 15 (0xf), region = 141 }
 0x416   : > { %s1987_s10 = smov %s1983_s29 }
 0x418   : > { %s1989_s13 = smov %s1985_s23 }
 0x419   :  { %959 = vsyncpa [#allocation6], 1 }
 0x41a   :  { %961 = vsyncpa [#allocation6 + $0x1], 1 }
 0x41b   :  { %962 = vsyncpa [#allocation9], 1 }
 0x41c   :  { %964 = vsyncpa [#allocation9 + $0x1], 1 }
 0x41d   :  { %965 = vsyncpa [#allocation12], 1 }
 0x41e   :  { %966 = vsyncpa [#allocation15], 1 }
 0x41f   :  { %967 = vsyncpa [#allocation7], 1 }
 0x420   :  { %969 = vsyncpa [#allocation7 + $0x1], 1 }

</bundles_post_ra>
